<compile_context>
chip_gen: v7x
topology: tpu7x:2x2x1
jax: 0.10.0
libtpu: 0.0.40
codegen_flags: <defaults>
</compile_context>

<pallas_src>
import jax
import jax.numpy as jnp
from jax.experimental import pallas as pl
from jax.experimental.pallas import tpu as pltpu

INPUT_SIZE = 1
HIDDEN = 128          # lane-aligned stand-in for the module default 300
OUTPUT_SIZE = 1
SEQ_LEN = 8

assert HIDDEN % 128 == 0, "gate slices must stay lane-aligned (HIDDEN % 128 == 0)"
assert OUTPUT_SIZE == 1, "final linear is lowered as VPU mul + lane reduce (needs output_size == 1)"


def lstm_kernel(x_ref, wih_ref, whh_ref, b_ref, wlin_ref, blin_ref, out_ref):
    """Full LSTM recurrence + final linear projection in one kernel.

    x_ref    : (S, input_size)     VMEM
    wih_ref  : (input_size, 4H)    VMEM   gate columns ordered [i | f | o | g]
    whh_ref  : (H, 4H)             VMEM   gate columns ordered [i | f | o | g]
    b_ref    : (1, 4H)             VMEM   b_ih + b_hh, same gate ordering
    wlin_ref : (1, H)              VMEM   final linear weight row
    blin_ref : (1, output_size)    VMEM
    out_ref  : (1, output_size)    VMEM   -> predictions[-1]
    """
    S = x_ref.shape[0]
    H = whh_ref.shape[0]

    # bf16 MXU operands (single MXU pass / step); accumulation stays f32.
    whh_bf16 = whh_ref[...].astype(jnp.bfloat16)
    bias = b_ref[...]

    # Hoisted input projection: all S timesteps at once, off the serial chain.
    if x_ref.shape[1] == 1:
        gates_x = x_ref[...] * wih_ref[...] + bias           # (S,1)*(1,4H) -> (S,4H)
    else:
        gates_x = (
            jnp.dot(x_ref[...].astype(jnp.bfloat16),
                    wih_ref[...].astype(jnp.bfloat16),
                    preferred_element_type=jnp.float32)
            + bias
        )

    def fused_sigmoid(x):
        # sigmoid(x) == 0.5 * (tanh(0.5 * x) + 1): one EUP push per slab.
        return 0.5 * (jnp.tanh(0.5 * x) + 1.0)

    def step_update(gates, c_prev, first):
        sig = fused_sigmoid(gates[:, : 3 * H])               # fused [i | f | o]
        g_g = jnp.tanh(gates[:, 3 * H:])
        i_g = sig[:, 0 * H:1 * H]
        o_g = sig[:, 2 * H:3 * H]
        if first:
            c = i_g * g_g                                    # c0 == 0: drop f_g * c
        else:
            f_g = sig[:, 1 * H:2 * H]
            c = f_g * c_prev + i_g * g_g
        h = o_g * jnp.tanh(c)
        return h, c

    # t = 0: h0 == 0, so gates == gates_x[0]; no MXU op on the serial chain.
    h, c = step_update(gates_x[0:1, :], None, first=True)

    # Remaining steps fully unrolled (S is small and static): static slices,
    # full scheduler visibility across steps.
    for t in range(1, S):
        gates = gates_x[t:t + 1, :] + jnp.dot(
            h.astype(jnp.bfloat16), whh_bf16,
            preferred_element_type=jnp.float32,
        )                                                    # (1, 4H)
        h, c = step_update(gates, c, first=False)

    # Final Linear(H, 1): VPU multiply + lane reduce (no MXU push for N=1).
    out_ref[...] = (
        jnp.sum(h * wlin_ref[...], axis=-1, keepdims=True) + blin_ref[...]
    )


def lstm_forward(input_seq, params):
    """Mirror of LSTM.forward: returns predictions[-1] with shape (output_size,)."""
    w_ih_t, w_hh_t, bias, w_lin_row, b_lin = params
    S = input_seq.shape[0]
    x = input_seq.reshape(S, INPUT_SIZE).astype(jnp.float32)

    vmem = pl.BlockSpec(memory_space=pltpu.MemorySpace.VMEM)
    out = pl.pallas_call(
        lstm_kernel,
        out_shape=jax.ShapeDtypeStruct((1, OUTPUT_SIZE), jnp.float32),
        in_specs=[vmem] * 6,
        out_specs=vmem,
    )(x, w_ih_t, w_hh_t, bias, w_lin_row, b_lin)
    return out[0]  # (output_size,) == predictions[-1]


def init_torch_params(key):
    """Raw PyTorch-shaped parameters (uniform +-1/sqrt(H))."""
    k = 1.0 / jnp.sqrt(jnp.float32(HIDDEN))
    keys = jax.random.split(key, 6)
    w_ih = jax.random.uniform(keys[0], (4 * HIDDEN, INPUT_SIZE), jnp.float32, -k, k)
    w_hh = jax.random.uniform(keys[1], (4 * HIDDEN, HIDDEN), jnp.float32, -k, k)
    b_ih = jax.random.uniform(keys[2], (4 * HIDDEN,), jnp.float32, -k, k)
    b_hh = jax.random.uniform(keys[3], (4 * HIDDEN,), jnp.float32, -k, k)
    w_lin = jax.random.uniform(keys[4], (OUTPUT_SIZE, HIDDEN), jnp.float32, -k, k)
    b_lin = jax.random.uniform(keys[5], (OUTPUT_SIZE,), jnp.float32, -k, k)
    return (w_ih, w_hh, b_ih, b_hh, w_lin, b_lin)


def prepare_params(raw):
    """PyTorch layout -> kernel layout: transpose, sum biases, permute gate
    columns from PyTorch's [i, f, g, o] to the kernel's [i, f, o, g] so the
    three sigmoids fuse into one contiguous (1, 3H) slab."""
    w_ih, w_hh, b_ih, b_hh, w_lin, b_lin = raw
    H = HIDDEN
    perm = jnp.concatenate([
        jnp.arange(0, 2 * H),        # i, f
        jnp.arange(3 * H, 4 * H),    # o
        jnp.arange(2 * H, 3 * H),    # g
    ])
    w_ih_t = w_ih.T[:, perm]                         # (input_size, 4H)
    w_hh_t = w_hh.T[:, perm]                         # (H, 4H)
    bias = (b_ih + b_hh)[perm].reshape(1, 4 * H)     # (1, 4H)
    w_lin_row = w_lin.reshape(1, H)                  # (1, H)
    b_lin2 = b_lin.reshape(1, OUTPUT_SIZE)           # (1, output_size)
    return (w_ih_t, w_hh_t, bias, w_lin_row, b_lin2)


def reference_forward(input_seq, raw):
    """Pure-JAX f32 reference of the PyTorch forward (gate order i, f, g, o)."""
    w_ih, w_hh, b_ih, b_hh, w_lin, b_lin = raw
    H = HIDDEN
    x = input_seq.reshape(-1, INPUT_SIZE).astype(jnp.float32)
    h = jnp.zeros((1, H), jnp.float32)
    c = jnp.zeros((1, H), jnp.float32)
    for t in range(x.shape[0]):
        gates = x[t:t + 1] @ w_ih.T + h @ w_hh.T + (b_ih + b_hh)
        i_g = jax.nn.sigmoid(gates[:, 0 * H:1 * H])
        f_g = jax.nn.sigmoid(gates[:, 1 * H:2 * H])
        g_g = jnp.tanh(gates[:, 2 * H:3 * H])
        o_g = jax.nn.sigmoid(gates[:, 3 * H:4 * H])
        c = f_g * c + i_g * g_g
        h = o_g * jnp.tanh(c)
    return (h @ w_lin.T + b_lin)[0]


if __name__ == "__main__":
    key = jax.random.PRNGKey(0)
    pkey, xkey = jax.random.split(key)
    raw_params = init_torch_params(pkey)
    params = prepare_params(raw_params)
    input_seq = jax.random.normal(xkey, (SEQ_LEN,), jnp.float32)

    out = lstm_forward(input_seq, params)
    out = jax.block_until_ready(out)

    ref = reference_forward(input_seq, raw_params)
    assert out.shape == (OUTPUT_SIZE,)
    # bf16 MXU operands in the kernel (f32 accumulation) vs. an f32 reference:
    # tolerance sized for one bf16 matvec per step over 8 steps.
    assert jnp.allclose(out, ref, atol=2e-3, rtol=2e-3), (out, ref)

    print("KERNEL_OK")
</pallas_src>

<mosaic_0001>
module attributes {stable_mosaic.version = 11 : i64} {
  func.func @lstm_kernel(%arg0: memref<8x1xf32, #tpu.memory_space<vmem>>, %arg1: memref<1x512xf32, #tpu.memory_space<vmem>>, %arg2: memref<128x512xf32, #tpu.memory_space<vmem>>, %arg3: memref<1x512xf32, #tpu.memory_space<vmem>>, %arg4: memref<1x128xf32, #tpu.memory_space<vmem>>, %arg5: memref<1x1xf32, #tpu.memory_space<vmem>>, %arg6: memref<1x1xf32, #tpu.memory_space<vmem>>) attributes {dimension_semantics = [], scalar_prefetch = 0 : i64, scratch_operands = 0 : i64, tpu.core_type = #tpu.core_type<tc>} {
    %c0 = arith.constant 0 : index
    %c0_0 = arith.constant 0 : index
    %0 = vector.load %arg2[%c0, %c0_0] : memref<128x512xf32, #tpu.memory_space<vmem>>, vector<128x512xf32>
    %1 = arith.truncf %0 : vector<128x512xf32> to vector<128x512xbf16>
    %c0_1 = arith.constant 0 : index
    %c0_2 = arith.constant 0 : index
    %2 = vector.load %arg3[%c0_1, %c0_2] : memref<1x512xf32, #tpu.memory_space<vmem>>, vector<1x512xf32>
    %c0_3 = arith.constant 0 : index
    %c0_4 = arith.constant 0 : index
    %3 = vector.load %arg0[%c0_3, %c0_4] : memref<8x1xf32, #tpu.memory_space<vmem>>, vector<8x1xf32>
    %c0_5 = arith.constant 0 : index
    %c0_6 = arith.constant 0 : index
    %4 = vector.load %arg1[%c0_5, %c0_6] : memref<1x512xf32, #tpu.memory_space<vmem>>, vector<1x512xf32>
    %5 = vector.broadcast %3 : vector<8x1xf32> to vector<8x512xf32>
    %6 = vector.broadcast %4 : vector<1x512xf32> to vector<8x512xf32>
    %7 = arith.mulf %5, %6 : vector<8x512xf32>
    %8 = vector.broadcast %2 : vector<1x512xf32> to vector<8x512xf32>
    %9 = arith.addf %7, %8 : vector<8x512xf32>
    %10 = vector.extract_strided_slice %9 {offsets = [0, 0], sizes = [1, 512], strides = [1, 1]} : vector<8x512xf32> to vector<1x512xf32>
    %11 = vector.extract_strided_slice %10 {offsets = [0, 0], sizes = [1, 384], strides = [1, 1]} : vector<1x512xf32> to vector<1x384xf32>
    %cst = arith.constant 5.000000e-01 : f32
    %12 = vector.broadcast %cst : f32 to vector<1x384xf32>
    %13 = arith.mulf %12, %11 : vector<1x384xf32>
    %14 = math.tanh %13 : vector<1x384xf32>
    %cst_7 = arith.constant 1.000000e+00 : f32
    %15 = vector.broadcast %cst_7 : f32 to vector<1x384xf32>
    %16 = arith.addf %14, %15 : vector<1x384xf32>
    %cst_8 = arith.constant 5.000000e-01 : f32
    %17 = vector.broadcast %cst_8 : f32 to vector<1x384xf32>
    %18 = arith.mulf %17, %16 : vector<1x384xf32>
    %19 = vector.extract_strided_slice %10 {offsets = [0, 384], sizes = [1, 128], strides = [1, 1]} : vector<1x512xf32> to vector<1x128xf32>
    %20 = math.tanh %19 : vector<1x128xf32>
    %21 = vector.extract_strided_slice %18 {offsets = [0, 0], sizes = [1, 128], strides = [1, 1]} : vector<1x384xf32> to vector<1x128xf32>
    %22 = vector.extract_strided_slice %18 {offsets = [0, 256], sizes = [1, 128], strides = [1, 1]} : vector<1x384xf32> to vector<1x128xf32>
    %23 = arith.mulf %21, %20 : vector<1x128xf32>
    %24 = math.tanh %23 : vector<1x128xf32>
    %25 = arith.mulf %22, %24 : vector<1x128xf32>
    %26 = vector.extract_strided_slice %9 {offsets = [1, 0], sizes = [1, 512], strides = [1, 1]} : vector<8x512xf32> to vector<1x512xf32>
    %27 = arith.truncf %25 : vector<1x128xf32> to vector<1x128xbf16>
    %cst_9 = arith.constant dense<0.000000e+00> : vector<1x512xf32>
    %28 = tpu.matmul %27, %1, %cst_9 {dimension_numbers = #tpu.dot_dimension_numbers<[1], [0], [0], [1], [0, 0, 1, 1], [], []>} : vector<1x128xbf16>, vector<128x512xbf16>, vector<1x512xf32> -> vector<1x512xf32>
    %29 = arith.addf %26, %28 : vector<1x512xf32>
    %30 = vector.extract_strided_slice %29 {offsets = [0, 0], sizes = [1, 384], strides = [1, 1]} : vector<1x512xf32> to vector<1x384xf32>
    %cst_10 = arith.constant 5.000000e-01 : f32
    %31 = vector.broadcast %cst_10 : f32 to vector<1x384xf32>
    %32 = arith.mulf %31, %30 : vector<1x384xf32>
    %33 = math.tanh %32 : vector<1x384xf32>
    %cst_11 = arith.constant 1.000000e+00 : f32
    %34 = vector.broadcast %cst_11 : f32 to vector<1x384xf32>
    %35 = arith.addf %33, %34 : vector<1x384xf32>
    %cst_12 = arith.constant 5.000000e-01 : f32
    %36 = vector.broadcast %cst_12 : f32 to vector<1x384xf32>
    %37 = arith.mulf %36, %35 : vector<1x384xf32>
    %38 = vector.extract_strided_slice %29 {offsets = [0, 384], sizes = [1, 128], strides = [1, 1]} : vector<1x512xf32> to vector<1x128xf32>
    %39 = math.tanh %38 : vector<1x128xf32>
    %40 = vector.extract_strided_slice %37 {offsets = [0, 0], sizes = [1, 128], strides = [1, 1]} : vector<1x384xf32> to vector<1x128xf32>
    %41 = vector.extract_strided_slice %37 {offsets = [0, 256], sizes = [1, 128], strides = [1, 1]} : vector<1x384xf32> to vector<1x128xf32>
    %42 = vector.extract_strided_slice %37 {offsets = [0, 128], sizes = [1, 128], strides = [1, 1]} : vector<1x384xf32> to vector<1x128xf32>
    %43 = arith.mulf %42, %23 : vector<1x128xf32>
    %44 = arith.mulf %40, %39 : vector<1x128xf32>
    %45 = arith.addf %43, %44 : vector<1x128xf32>
    %46 = math.tanh %45 : vector<1x128xf32>
    %47 = arith.mulf %41, %46 : vector<1x128xf32>
    %48 = vector.extract_strided_slice %9 {offsets = [2, 0], sizes = [1, 512], strides = [1, 1]} : vector<8x512xf32> to vector<1x512xf32>
    %49 = arith.truncf %47 : vector<1x128xf32> to vector<1x128xbf16>
    %cst_13 = arith.constant dense<0.000000e+00> : vector<1x512xf32>
    %50 = tpu.matmul %49, %1, %cst_13 {dimension_numbers = #tpu.dot_dimension_numbers<[1], [0], [0], [1], [0, 0, 1, 1], [], []>} : vector<1x128xbf16>, vector<128x512xbf16>, vector<1x512xf32> -> vector<1x512xf32>
    %51 = arith.addf %48, %50 : vector<1x512xf32>
    %52 = vector.extract_strided_slice %51 {offsets = [0, 0], sizes = [1, 384], strides = [1, 1]} : vector<1x512xf32> to vector<1x384xf32>
    %cst_14 = arith.constant 5.000000e-01 : f32
    %53 = vector.broadcast %cst_14 : f32 to vector<1x384xf32>
    %54 = arith.mulf %53, %52 : vector<1x384xf32>
    %55 = math.tanh %54 : vector<1x384xf32>
    %cst_15 = arith.constant 1.000000e+00 : f32
    %56 = vector.broadcast %cst_15 : f32 to vector<1x384xf32>
    %57 = arith.addf %55, %56 : vector<1x384xf32>
    %cst_16 = arith.constant 5.000000e-01 : f32
    %58 = vector.broadcast %cst_16 : f32 to vector<1x384xf32>
    %59 = arith.mulf %58, %57 : vector<1x384xf32>
    %60 = vector.extract_strided_slice %51 {offsets = [0, 384], sizes = [1, 128], strides = [1, 1]} : vector<1x512xf32> to vector<1x128xf32>
    %61 = math.tanh %60 : vector<1x128xf32>
    %62 = vector.extract_strided_slice %59 {offsets = [0, 0], sizes = [1, 128], strides = [1, 1]} : vector<1x384xf32> to vector<1x128xf32>
    %63 = vector.extract_strided_slice %59 {offsets = [0, 256], sizes = [1, 128], strides = [1, 1]} : vector<1x384xf32> to vector<1x128xf32>
    %64 = vector.extract_strided_slice %59 {offsets = [0, 128], sizes = [1, 128], strides = [1, 1]} : vector<1x384xf32> to vector<1x128xf32>
    %65 = arith.mulf %64, %45 : vector<1x128xf32>
    %66 = arith.mulf %62, %61 : vector<1x128xf32>
    %67 = arith.addf %65, %66 : vector<1x128xf32>
    %68 = math.tanh %67 : vector<1x128xf32>
    %69 = arith.mulf %63, %68 : vector<1x128xf32>
    %70 = vector.extract_strided_slice %9 {offsets = [3, 0], sizes = [1, 512], strides = [1, 1]} : vector<8x512xf32> to vector<1x512xf32>
    %71 = arith.truncf %69 : vector<1x128xf32> to vector<1x128xbf16>
    %cst_17 = arith.constant dense<0.000000e+00> : vector<1x512xf32>
    %72 = tpu.matmul %71, %1, %cst_17 {dimension_numbers = #tpu.dot_dimension_numbers<[1], [0], [0], [1], [0, 0, 1, 1], [], []>} : vector<1x128xbf16>, vector<128x512xbf16>, vector<1x512xf32> -> vector<1x512xf32>
    %73 = arith.addf %70, %72 : vector<1x512xf32>
    %74 = vector.extract_strided_slice %73 {offsets = [0, 0], sizes = [1, 384], strides = [1, 1]} : vector<1x512xf32> to vector<1x384xf32>
    %cst_18 = arith.constant 5.000000e-01 : f32
    %75 = vector.broadcast %cst_18 : f32 to vector<1x384xf32>
    %76 = arith.mulf %75, %74 : vector<1x384xf32>
    %77 = math.tanh %76 : vector<1x384xf32>
    %cst_19 = arith.constant 1.000000e+00 : f32
    %78 = vector.broadcast %cst_19 : f32 to vector<1x384xf32>
    %79 = arith.addf %77, %78 : vector<1x384xf32>
    %cst_20 = arith.constant 5.000000e-01 : f32
    %80 = vector.broadcast %cst_20 : f32 to vector<1x384xf32>
    %81 = arith.mulf %80, %79 : vector<1x384xf32>
    %82 = vector.extract_strided_slice %73 {offsets = [0, 384], sizes = [1, 128], strides = [1, 1]} : vector<1x512xf32> to vector<1x128xf32>
    %83 = math.tanh %82 : vector<1x128xf32>
    %84 = vector.extract_strided_slice %81 {offsets = [0, 0], sizes = [1, 128], strides = [1, 1]} : vector<1x384xf32> to vector<1x128xf32>
    %85 = vector.extract_strided_slice %81 {offsets = [0, 256], sizes = [1, 128], strides = [1, 1]} : vector<1x384xf32> to vector<1x128xf32>
    %86 = vector.extract_strided_slice %81 {offsets = [0, 128], sizes = [1, 128], strides = [1, 1]} : vector<1x384xf32> to vector<1x128xf32>
    %87 = arith.mulf %86, %67 : vector<1x128xf32>
    %88 = arith.mulf %84, %83 : vector<1x128xf32>
    %89 = arith.addf %87, %88 : vector<1x128xf32>
    %90 = math.tanh %89 : vector<1x128xf32>
    %91 = arith.mulf %85, %90 : vector<1x128xf32>
    %92 = vector.extract_strided_slice %9 {offsets = [4, 0], sizes = [1, 512], strides = [1, 1]} : vector<8x512xf32> to vector<1x512xf32>
    %93 = arith.truncf %91 : vector<1x128xf32> to vector<1x128xbf16>
    %cst_21 = arith.constant dense<0.000000e+00> : vector<1x512xf32>
    %94 = tpu.matmul %93, %1, %cst_21 {dimension_numbers = #tpu.dot_dimension_numbers<[1], [0], [0], [1], [0, 0, 1, 1], [], []>} : vector<1x128xbf16>, vector<128x512xbf16>, vector<1x512xf32> -> vector<1x512xf32>
    %95 = arith.addf %92, %94 : vector<1x512xf32>
    %96 = vector.extract_strided_slice %95 {offsets = [0, 0], sizes = [1, 384], strides = [1, 1]} : vector<1x512xf32> to vector<1x384xf32>
    %cst_22 = arith.constant 5.000000e-01 : f32
    %97 = vector.broadcast %cst_22 : f32 to vector<1x384xf32>
    %98 = arith.mulf %97, %96 : vector<1x384xf32>
    %99 = math.tanh %98 : vector<1x384xf32>
    %cst_23 = arith.constant 1.000000e+00 : f32
    %100 = vector.broadcast %cst_23 : f32 to vector<1x384xf32>
    %101 = arith.addf %99, %100 : vector<1x384xf32>
    %cst_24 = arith.constant 5.000000e-01 : f32
    %102 = vector.broadcast %cst_24 : f32 to vector<1x384xf32>
    %103 = arith.mulf %102, %101 : vector<1x384xf32>
    %104 = vector.extract_strided_slice %95 {offsets = [0, 384], sizes = [1, 128], strides = [1, 1]} : vector<1x512xf32> to vector<1x128xf32>
    %105 = math.tanh %104 : vector<1x128xf32>
    %106 = vector.extract_strided_slice %103 {offsets = [0, 0], sizes = [1, 128], strides = [1, 1]} : vector<1x384xf32> to vector<1x128xf32>
    %107 = vector.extract_strided_slice %103 {offsets = [0, 256], sizes = [1, 128], strides = [1, 1]} : vector<1x384xf32> to vector<1x128xf32>
    %108 = vector.extract_strided_slice %103 {offsets = [0, 128], sizes = [1, 128], strides = [1, 1]} : vector<1x384xf32> to vector<1x128xf32>
    %109 = arith.mulf %108, %89 : vector<1x128xf32>
    %110 = arith.mulf %106, %105 : vector<1x128xf32>
    %111 = arith.addf %109, %110 : vector<1x128xf32>
    %112 = math.tanh %111 : vector<1x128xf32>
    %113 = arith.mulf %107, %112 : vector<1x128xf32>
    %114 = vector.extract_strided_slice %9 {offsets = [5, 0], sizes = [1, 512], strides = [1, 1]} : vector<8x512xf32> to vector<1x512xf32>
    %115 = arith.truncf %113 : vector<1x128xf32> to vector<1x128xbf16>
    %cst_25 = arith.constant dense<0.000000e+00> : vector<1x512xf32>
    %116 = tpu.matmul %115, %1, %cst_25 {dimension_numbers = #tpu.dot_dimension_numbers<[1], [0], [0], [1], [0, 0, 1, 1], [], []>} : vector<1x128xbf16>, vector<128x512xbf16>, vector<1x512xf32> -> vector<1x512xf32>
    %117 = arith.addf %114, %116 : vector<1x512xf32>
    %118 = vector.extract_strided_slice %117 {offsets = [0, 0], sizes = [1, 384], strides = [1, 1]} : vector<1x512xf32> to vector<1x384xf32>
    %cst_26 = arith.constant 5.000000e-01 : f32
    %119 = vector.broadcast %cst_26 : f32 to vector<1x384xf32>
    %120 = arith.mulf %119, %118 : vector<1x384xf32>
    %121 = math.tanh %120 : vector<1x384xf32>
    %cst_27 = arith.constant 1.000000e+00 : f32
    %122 = vector.broadcast %cst_27 : f32 to vector<1x384xf32>
    %123 = arith.addf %121, %122 : vector<1x384xf32>
    %cst_28 = arith.constant 5.000000e-01 : f32
    %124 = vector.broadcast %cst_28 : f32 to vector<1x384xf32>
    %125 = arith.mulf %124, %123 : vector<1x384xf32>
    %126 = vector.extract_strided_slice %117 {offsets = [0, 384], sizes = [1, 128], strides = [1, 1]} : vector<1x512xf32> to vector<1x128xf32>
    %127 = math.tanh %126 : vector<1x128xf32>
    %128 = vector.extract_strided_slice %125 {offsets = [0, 0], sizes = [1, 128], strides = [1, 1]} : vector<1x384xf32> to vector<1x128xf32>
    %129 = vector.extract_strided_slice %125 {offsets = [0, 256], sizes = [1, 128], strides = [1, 1]} : vector<1x384xf32> to vector<1x128xf32>
    %130 = vector.extract_strided_slice %125 {offsets = [0, 128], sizes = [1, 128], strides = [1, 1]} : vector<1x384xf32> to vector<1x128xf32>
    %131 = arith.mulf %130, %111 : vector<1x128xf32>
    %132 = arith.mulf %128, %127 : vector<1x128xf32>
    %133 = arith.addf %131, %132 : vector<1x128xf32>
    %134 = math.tanh %133 : vector<1x128xf32>
    %135 = arith.mulf %129, %134 : vector<1x128xf32>
    %136 = vector.extract_strided_slice %9 {offsets = [6, 0], sizes = [1, 512], strides = [1, 1]} : vector<8x512xf32> to vector<1x512xf32>
    %137 = arith.truncf %135 : vector<1x128xf32> to vector<1x128xbf16>
    %cst_29 = arith.constant dense<0.000000e+00> : vector<1x512xf32>
    %138 = tpu.matmul %137, %1, %cst_29 {dimension_numbers = #tpu.dot_dimension_numbers<[1], [0], [0], [1], [0, 0, 1, 1], [], []>} : vector<1x128xbf16>, vector<128x512xbf16>, vector<1x512xf32> -> vector<1x512xf32>
    %139 = arith.addf %136, %138 : vector<1x512xf32>
    %140 = vector.extract_strided_slice %139 {offsets = [0, 0], sizes = [1, 384], strides = [1, 1]} : vector<1x512xf32> to vector<1x384xf32>
    %cst_30 = arith.constant 5.000000e-01 : f32
    %141 = vector.broadcast %cst_30 : f32 to vector<1x384xf32>
    %142 = arith.mulf %141, %140 : vector<1x384xf32>
    %143 = math.tanh %142 : vector<1x384xf32>
    %cst_31 = arith.constant 1.000000e+00 : f32
    %144 = vector.broadcast %cst_31 : f32 to vector<1x384xf32>
    %145 = arith.addf %143, %144 : vector<1x384xf32>
    %cst_32 = arith.constant 5.000000e-01 : f32
    %146 = vector.broadcast %cst_32 : f32 to vector<1x384xf32>
    %147 = arith.mulf %146, %145 : vector<1x384xf32>
    %148 = vector.extract_strided_slice %139 {offsets = [0, 384], sizes = [1, 128], strides = [1, 1]} : vector<1x512xf32> to vector<1x128xf32>
    %149 = math.tanh %148 : vector<1x128xf32>
    %150 = vector.extract_strided_slice %147 {offsets = [0, 0], sizes = [1, 128], strides = [1, 1]} : vector<1x384xf32> to vector<1x128xf32>
    %151 = vector.extract_strided_slice %147 {offsets = [0, 256], sizes = [1, 128], strides = [1, 1]} : vector<1x384xf32> to vector<1x128xf32>
    %152 = vector.extract_strided_slice %147 {offsets = [0, 128], sizes = [1, 128], strides = [1, 1]} : vector<1x384xf32> to vector<1x128xf32>
    %153 = arith.mulf %152, %133 : vector<1x128xf32>
    %154 = arith.mulf %150, %149 : vector<1x128xf32>
    %155 = arith.addf %153, %154 : vector<1x128xf32>
    %156 = math.tanh %155 : vector<1x128xf32>
    %157 = arith.mulf %151, %156 : vector<1x128xf32>
    %158 = vector.extract_strided_slice %9 {offsets = [7, 0], sizes = [1, 512], strides = [1, 1]} : vector<8x512xf32> to vector<1x512xf32>
    %159 = arith.truncf %157 : vector<1x128xf32> to vector<1x128xbf16>
    %cst_33 = arith.constant dense<0.000000e+00> : vector<1x512xf32>
    %160 = tpu.matmul %159, %1, %cst_33 {dimension_numbers = #tpu.dot_dimension_numbers<[1], [0], [0], [1], [0, 0, 1, 1], [], []>} : vector<1x128xbf16>, vector<128x512xbf16>, vector<1x512xf32> -> vector<1x512xf32>
    %161 = arith.addf %158, %160 : vector<1x512xf32>
    %162 = vector.extract_strided_slice %161 {offsets = [0, 0], sizes = [1, 384], strides = [1, 1]} : vector<1x512xf32> to vector<1x384xf32>
    %cst_34 = arith.constant 5.000000e-01 : f32
    %163 = vector.broadcast %cst_34 : f32 to vector<1x384xf32>
    %164 = arith.mulf %163, %162 : vector<1x384xf32>
    %165 = math.tanh %164 : vector<1x384xf32>
    %cst_35 = arith.constant 1.000000e+00 : f32
    %166 = vector.broadcast %cst_35 : f32 to vector<1x384xf32>
    %167 = arith.addf %165, %166 : vector<1x384xf32>
    %cst_36 = arith.constant 5.000000e-01 : f32
    %168 = vector.broadcast %cst_36 : f32 to vector<1x384xf32>
    %169 = arith.mulf %168, %167 : vector<1x384xf32>
    %170 = vector.extract_strided_slice %161 {offsets = [0, 384], sizes = [1, 128], strides = [1, 1]} : vector<1x512xf32> to vector<1x128xf32>
    %171 = math.tanh %170 : vector<1x128xf32>
    %172 = vector.extract_strided_slice %169 {offsets = [0, 0], sizes = [1, 128], strides = [1, 1]} : vector<1x384xf32> to vector<1x128xf32>
    %173 = vector.extract_strided_slice %169 {offsets = [0, 256], sizes = [1, 128], strides = [1, 1]} : vector<1x384xf32> to vector<1x128xf32>
    %174 = vector.extract_strided_slice %169 {offsets = [0, 128], sizes = [1, 128], strides = [1, 1]} : vector<1x384xf32> to vector<1x128xf32>
    %175 = arith.mulf %174, %155 : vector<1x128xf32>
    %176 = arith.mulf %172, %171 : vector<1x128xf32>
    %177 = arith.addf %175, %176 : vector<1x128xf32>
    %178 = math.tanh %177 : vector<1x128xf32>
    %179 = arith.mulf %173, %178 : vector<1x128xf32>
    %c0_37 = arith.constant 0 : index
    %c0_38 = arith.constant 0 : index
    %180 = vector.load %arg4[%c0_37, %c0_38] : memref<1x128xf32, #tpu.memory_space<vmem>>, vector<1x128xf32>
    %181 = arith.mulf %179, %180 : vector<1x128xf32>
    %cst_39 = arith.constant dense<0.000000e+00> : vector<1xf32>
    %182 = vector.multi_reduction <add>, %181, %cst_39 [1] : vector<1x128xf32> to vector<1xf32>
    %183 = vector.shape_cast %182 : vector<1xf32> to vector<1x1xf32>
    %c0_40 = arith.constant 0 : index
    %c0_41 = arith.constant 0 : index
    %184 = vector.load %arg5[%c0_40, %c0_41] : memref<1x1xf32, #tpu.memory_space<vmem>>, vector<1x1xf32>
    %185 = arith.addf %183, %184 : vector<1x1xf32>
    %c0_42 = arith.constant 0 : index
    %c0_43 = arith.constant 0 : index
    %186 = vector.load %arg6[%c0_42, %c0_43] : memref<1x1xf32, #tpu.memory_space<vmem>>, vector<1x1xf32>
    tpu.vector_store %arg6[%c0_42, %c0_43], %185 {strides = array<i32>} : memref<1x1xf32, #tpu.memory_space<vmem>>, vector<1x1xf32>,
    return
  }
}

</mosaic_0001>

<bundles_post_ra>
// kernel: tpu_custom_call.1
= control target key start
LH: loop header
LB: loop body
LE: loop exit
PB: predicated region body
PF: predicated region fallthrough
CT: control target
= control target key end

     0   :  { %s1710_s0 = inlined_call_operand.vmem [shape: f32[8,1], index: 0, kind: input, shape index: {}]   ;;  %s1711_s1 = inlined_call_operand.vmem [shape: f32[1,512], index: 1, kind: input, shape index: {}]   ;;  %s1712_s2 = inlined_call_operand.hbm [shape: f32[128,512], index: 2, kind: input, shape index: {}]   ;;  %s1713_s3 = inlined_call_operand.vmem [shape: f32[1,512], index: 3, kind: input, shape index: {}]   ;;  %s1714_s4 = inlined_call_operand.vmem [shape: f32[1,128], index: 4, kind: input, shape index: {}]   ;;  %s1715_s5 = inlined_call_operand.<no memory space> [shape: f32[1,1], index: 5, kind: input, shape index: {}]   ;;  %s1716_s6 = inlined_call_operand.hbm [shape: f32[1,1], index: 6, kind: output, shape index: {}]  }
   0x1   :  { %v11_v0 = vstv %s1715_s5 }
   0x2   :  { %12 = vst [vmem:[#allocation2] sm:$0x1] %v11_v0 }
   0x3   :  { %13 = vsyncpa [#allocation4], 0 }
   0x4   :  { %14 = vsyncpa [#allocation5], 0  ;;  %s1241_s23 = smov [#allocation3]   ;;  %s1193_s27 = scalar_lea.hbm %s1712_s2, 8192 }
   0x5   :  { %s24_s24 = sshll.u32 %s1241_s23, 4  ;;  %p1194_p0 = scmp.ne.s32.totalorder %s1712_s2, %s1193_s27  ;;  %s25_s24 = int_to_ptr.vmem [resolvable:$true] %s24_s24 }
   0x6   :  { %p1197_p1 = scmp.lt.u32.totalorder %s1193_s27, %s1712_s2 }
   0x8   :  { %p1199_p2 = pnand %p1197_p1, %p1194_p0 }
   0xa   :  { %1202 = shalt.err (!%p1199_p2)
}
   0xb   :  { %s1203_s5 = scalar_lea.vmem %s25_s24, 8192  ;;  %p1208_p4 = scmp.lt.s32.totalorder %s25_s24, %s25_s24 }
   0xc   :  { %p1204_p3 = scmp.ne.s32.totalorder %s25_s24, %s1203_s5  ;;  %p1209_p5 = scmp.lt.s32.totalorder %s1203_s5, %s1203_s5 }
   0xe   :  { %p1210_p6 = por %p1209_p5, %p1208_p4 }
  0x10   :  { %p1211_p7 = pnand %p1210_p6, %p1204_p3 }
  0x12   :  { %1214 = shalt.err (!%p1211_p7)
}
  0x13   :  { %s1242_s8 = smov 512   ;;  %s1243_s9 = smov 32  }
  0x14   :  { %30 = dma.hbm_to_vmem [thread:$0]  %s1712_s2, 8192, %s25_s24, [#allocation4], %s1242_s8, %s1242_s8, %s1243_s9  }
  0x15   :  { %1237 = dma.done.wait [#allocation4], 8192  }
  0x16   :  { %1238 = vsyncadd [#allocation4], 4294959104  ;;  %v146_v1 = vlaneseq  ;;  %v1244_v2 = vmov 0   ;;  %v138_v5 = vld [vmem:[%s1710_s0] sm:$0xff]  ;;  %v42_v10 = vld [vmem:[#allocation3 + $0x8] sm:$0xff]  ;;  %vm1078_vm0 = vcmask 1047559  }
  0x17   :  { %1114 = vset.pattern.permute.xlu0 %v1244_v2  ;;  %240 = vmatprep.mubr.bf16.mxu0 %v1244_v2  ;;  %v1308_v6 = vld [vmem:[%s1711_s1] sm:$0xf]  ;;  %v46_v11 = vld [vmem:[#allocation3 + $0x28] sm:$0xff]  ;;  %v43_v19 = vld [vmem:[#allocation3 + $0x10] sm:$0xff]  ;;  %vm1090_vm1 = vcmask 7175  }
  0x18   :  { %v1298_v3 = vshrl.u32 %v146_v1, 7  ;;  %281 = vmatprep.mubr.bf16.mxu1 %v1244_v2  ;;  %v1313_v7 = vld [vmem:[%s1713_s3] sm:$0xf]  ;;  %142 = vperm.xlu0 %1114, %v138_v5   ;;  %v1321_v13 = vpack.c.bf16 %v46_v11, %v42_v10  ;;  %v47_v20 = vld [vmem:[#allocation3 + $0x30] sm:$0xff]  ;;  %v50_v21 = vld [vmem:[#allocation3 + $0x48] sm:$0xff]  ;;  %s1245_s3 = smov [#allocation6]  }
  0x19   :  { %v44_v12 = vld [vmem:[#allocation3 + $0x18] sm:$0xff]  ;;  %v41_v15 = vld [vmem:[#allocation3] sm:$0xff]  ;;  %v1328_v22 = vpack.c.bf16 %v47_v20, %v43_v19  ;;  %v54_v23 = vld [vmem:[#allocation3 + $0x68] sm:$0xff]  ;;  %s1098_s17 = sshll.u32 %s1245_s3, 4  ;;  %s1099_s17 = int_to_ptr.vmem [resolvable:$true] %s1098_s17 }
  0x1a   :  { %v152_v4 = vsub.s32 1, %v1298_v3  ;;  %v48_v14 = vld [vmem:[#allocation3 + $0x38] sm:$0xff]  ;;  %v45_v16 = vld [vmem:[#allocation3 + $0x20] sm:$0xff]  ;;  %208 = vmatprep.subr.bf16.mxu0 %v1321_v13  ;;  %v1332_v26 = vpack.c.bf16 %v54_v23, %v50_v21  ;;  %v51_v30 = vld [vmem:[#allocation3 + $0x50] sm:$0xff]  ;;  %s1215_s18 = scalar_lea.vmem %s1099_s17, 16  ;;  %s1219_s19 = scalar_lea.vmem %s1099_s17, 32 }
  0x1b   :  { %v1323_v17 = vpack.c.bf16 %v48_v14, %v44_v12  ;;  %v1325_v18 = vpack.c.bf16 %v45_v16, %v41_v15  ;;  %v52_v24 = vld [vmem:[#allocation3 + $0x58] sm:$0xff]  ;;  %v49_v28 = vld [vmem:[#allocation3 + $0x40] sm:$0xff]  ;;  %v55_v32 = vld [vmem:[#allocation3 + $0x70] sm:$0xff]  ;;  %p1216_p8 = scmp.ne.s32.totalorder %s1099_s17, %s1215_s18  ;;  %p1220_p9 = scmp.lt.s32.totalorder %s1099_s17, %s1099_s17 }
  0x1c   :  { %v1316_v8 = vrot.slane %v1308_v6, %v152_v4  ;;  %v1319_v9 = vrot.slane %v1313_v7, %v152_v4  ;;  %v56_v25 = vld [vmem:[#allocation3 + $0x78] sm:$0xff]  ;;  %v53_v29 = vld [vmem:[#allocation3 + $0x60] sm:$0xff]  ;;  %v58_v33 = vld [vmem:[#allocation3 + $0x88] sm:$0xff]  ;;  %v1341_v35 = vpack.c.bf16 %v55_v32, %v51_v30  ;;  %p1221_p10 = scmp.lt.s32.totalorder %s1219_s19, %s1215_s18 }
  0x1d   :  { %249 = vmatprep.subr.bf16.mxu1 %v1323_v17  ;;  %209 = vmatpush1.bf16.msra.mxu0 %v1325_v18  ;;  %v1334_v27 = vpack.c.bf16 %v56_v25, %v52_v24  ;;  %v1337_v31 = vpack.c.bf16 %v53_v29, %v49_v28  ;;  %v62_v34 = vld [vmem:[#allocation3 + $0xa8] sm:$0xff]  ;;  %v60_v37 = vld [vmem:[#allocation3 + $0x98] sm:$0xff]  ;;  %v57_v39 = vld [vmem:[#allocation3 + $0x80] sm:$0xff] }
  0x1e   :  { %250 = vmatpush1.bf16.msra.mxu1 %v1328_v22  ;;  %210 = vmatprep.subr.bf16.mxu0 %v1332_v26  ;;  %v1343_v36 = vpack.c.bf16 %v62_v34, %v58_v33  ;;  %v64_v38 = vld [vmem:[#allocation3 + $0xb8] sm:$0xff]  ;;  %v61_v41 = vld [vmem:[#allocation3 + $0xa0] sm:$0xff]  ;;  %v59_v42 = vld [vmem:[#allocation3 + $0x90] sm:$0xff]  ;;  %p1222_p11 = por %p1221_p10, %p1220_p9 }
  0x1f   :  { %251 = vmatprep.subr.bf16.mxu1 %v1334_v27  ;;  %v1345_v40 = vpack.c.bf16 %v64_v38, %v60_v37  ;;  %v63_v43 = vld [vmem:[#allocation3 + $0xb0] sm:$0xff]  ;;  %v1348_v44 = vpack.c.bf16 %v61_v41, %v57_v39  ;;  %v66_v45 = vld [vmem:[#allocation3 + $0xc8] sm:$0xff]  ;;  %v68_v47 = vld [vmem:[#allocation3 + $0xd8] sm:$0xff] }
  0x20   :  { %v70_v46 = vld [vmem:[#allocation3 + $0xe8] sm:$0xff]  ;;  %v1352_v48 = vpack.c.bf16 %v63_v43, %v59_v42  ;;  %v72_v50 = vld [vmem:[#allocation3 + $0xf8] sm:$0xff]  ;;  %v65_v51 = vld [vmem:[#allocation3 + $0xc0] sm:$0xff]  ;;  %p1223_p12 = pnand %p1222_p11, %p1216_p8 }
  0x21   :  { %211 = vmatpush1.bf16.msra.mxu0 %v1337_v31  ;;  %v1354_v49 = vpack.c.bf16 %v70_v46, %v66_v45  ;;  %v69_v52 = vld [vmem:[#allocation3 + $0xe0] sm:$0xff]  ;;  %v1357_v53 = vpack.c.bf16 %v72_v50, %v68_v47  ;;  %v67_v54 = vld [vmem:[#allocation3 + $0xd0] sm:$0xff]  ;;  %v74_v56 = vld [vmem:[#allocation3 + $0x108] sm:$0xff] }
  0x22   :  { %252 = vmatpush1.bf16.msra.mxu1 %v1341_v35  ;;  %212 = vmatprep.subr.bf16.mxu0 %v1343_v36  ;;  %v71_v55 = vld [vmem:[#allocation3 + $0xf0] sm:$0xff]  ;;  %v78_v57 = vld [vmem:[#allocation3 + $0x128] sm:$0xff]  ;;  %v76_v58 = vld [vmem:[#allocation3 + $0x118] sm:$0xff]  ;;  %v1360_v60 = vpack.c.bf16 %v69_v52, %v65_v51 }
  0x23   :  { %253 = vmatprep.subr.bf16.mxu1 %v1345_v40  ;;  %v80_v59 = vld [vmem:[#allocation3 + $0x138] sm:$0xff]  ;;  %v1364_v61 = vpack.c.bf16 %v71_v55, %v67_v54  ;;  %v1366_v62 = vpack.c.bf16 %v78_v57, %v74_v56  ;;  %v73_v63 = vld [vmem:[#allocation3 + $0x100] sm:$0xff]  ;;  %v75_v1 = vld [vmem:[#allocation3 + $0x110] sm:$0xff] }
  0x24   :  { %v77_v0 = vld [vmem:[#allocation3 + $0x120] sm:$0xff]  ;;  %v1369_v4 = vpack.c.bf16 %v80_v59, %v76_v58  ;;  %v79_v5 = vld [vmem:[#allocation3 + $0x130] sm:$0xff]  ;;  %v82_v10 = vld [vmem:[#allocation3 + $0x148] sm:$0xff] }
  0x25   :  { %213 = vmatpush1.bf16.msra.mxu0 %v1348_v44  ;;  %v86_v11 = vld [vmem:[#allocation3 + $0x168] sm:$0xff]  ;;  %v84_v12 = vld [vmem:[#allocation3 + $0x158] sm:$0xff]  ;;  %v1372_v15 = vpack.c.bf16 %v77_v0, %v73_v63  ;;  %v1376_v16 = vpack.c.bf16 %v79_v5, %v75_v1  ;;  %v81_v20 = vld [vmem:[#allocation3 + $0x140] sm:$0xff]  ;;  %v148_v1 = vsub.s32 0, %v1298_v3  ;;  %v160_v5 = vsub.s32 3, %v1298_v3 }
  0x26   :  { %254 = vmatpush1.bf16.msra.mxu1 %v1352_v48  ;;  %214 = vmatprep.subr.bf16.mxu0 %v1354_v49  ;;  %v88_v14 = vld [vmem:[#allocation3 + $0x178] sm:$0xff]  ;;  %v1378_v19 = vpack.c.bf16 %v86_v11, %v82_v10  ;;  %v85_v21 = vld [vmem:[#allocation3 + $0x160] sm:$0xff]  ;;  %v83_v23 = vld [vmem:[#allocation3 + $0x150] sm:$0xff]  ;;  %v156_v10 = vsub.s32 2, %v1298_v3 }
  0x27   :  { %255 = vmatprep.subr.bf16.mxu1 %v1357_v53  ;;  %v1381_v24 = vpack.c.bf16 %v88_v14, %v84_v12  ;;  %v87_v25 = vld [vmem:[#allocation3 + $0x170] sm:$0xff]  ;;  %v90_v28 = vld [vmem:[#allocation3 + $0x188] sm:$0xff]  ;;  %v92_v30 = vld [vmem:[#allocation3 + $0x198] sm:$0xff]  ;;  %v1384_v33 = vpack.c.bf16 %v85_v21, %v81_v20  ;;  %v149_v11 = vrot.slane %v1308_v6, %v148_v1  ;;  %v161_v12 = vrot.slane %v1308_v6, %v160_v5 }
  0x28   :  { %v94_v29 = vld [vmem:[#allocation3 + $0x1a8] sm:$0xff]  ;;  %v96_v32 = vld [vmem:[#allocation3 + $0x1b8] sm:$0xff]  ;;  %v1388_v34 = vpack.c.bf16 %v87_v25, %v83_v23  ;;  %v89_v38 = vld [vmem:[#allocation3 + $0x180] sm:$0xff]  ;;  %v174_v14 = vrot.slane %v1313_v7, %v148_v1  ;;  %v157_v20 = vrot.slane %v1308_v6, %v156_v10 }
  0x29   :  { %215 = vmatpush1.bf16.msra.mxu0 %v1360_v60  ;;  %v1390_v37 = vpack.c.bf16 %v94_v29, %v90_v28  ;;  %v93_v39 = vld [vmem:[#allocation3 + $0x1a0] sm:$0xff]  ;;  %v91_v41 = vld [vmem:[#allocation3 + $0x190] sm:$0xff]  ;;  %v1393_v42 = vpack.c.bf16 %v96_v32, %v92_v30  ;;  %v98_v45 = vld [vmem:[#allocation3 + $0x1c8] sm:$0xff]  ;;  %v186_v29 = vrot.slane %v1313_v7, %v160_v5 }
  0x2a   :  { %256 = vmatpush1.bf16.msra.mxu1 %v1364_v61  ;;  %216 = vmatprep.subr.bf16.mxu0 %v1366_v62  ;;  %v95_v43 = vld [vmem:[#allocation3 + $0x1b0] sm:$0xff]  ;;  %v102_v46 = vld [vmem:[#allocation3 + $0x1e8] sm:$0xff]  ;;  %v100_v47 = vld [vmem:[#allocation3 + $0x1d8] sm:$0xff]  ;;  %v1396_v51 = vpack.c.bf16 %v93_v39, %v89_v38  ;;  %v182_v38 = vrot.slane %v1313_v7, %v156_v10 }
  0x2b   :  { %257 = vmatprep.subr.bf16.mxu1 %v1369_v4  ;;  %v104_v50 = vld [vmem:[#allocation3 + $0x1f8] sm:$0xff]  ;;  %v1400_v52 = vpack.c.bf16 %v95_v43, %v91_v41  ;;  %v1402_v54 = vpack.c.bf16 %v102_v46, %v98_v45  ;;  %v97_v55 = vld [vmem:[#allocation3 + $0x1c0] sm:$0xff]  ;;  %v99_v58 = vld [vmem:[#allocation3 + $0x1d0] sm:$0xff] }
  0x2c   :  { %v101_v56 = vld [vmem:[#allocation3 + $0x1e0] sm:$0xff]  ;;  %v1405_v57 = vpack.c.bf16 %v104_v50, %v100_v47  ;;  %v103_v59 = vld [vmem:[#allocation3 + $0x1f0] sm:$0xff] }
  0x2d   :  { %217 = vmatpush1.bf16.msra.mxu0 %v1372_v15  ;;  %v1408_v63 = vpack.c.bf16 %v101_v56, %v97_v55  ;;  %v1412_v0 = vpack.c.bf16 %v103_v59, %v99_v58 }
  0x2e   :  { %258 = vmatpush1.bf16.msra.mxu1 %v1376_v16  ;;  %218 = vmatprep.subr.bf16.mxu0 %v1378_v19 }
  0x2f   :  { %259 = vmatprep.subr.bf16.mxu1 %v1381_v24 }
  0x31   :  { %219 = vmatpush1.bf16.msra.mxu0 %v1384_v33 }
  0x32   :  { %260 = vmatpush1.bf16.msra.mxu1 %v1388_v34  ;;  %220 = vmatprep.subr.bf16.mxu0 %v1390_v37 }
  0x33   :  { %261 = vmatprep.subr.bf16.mxu1 %v1393_v42 }
  0x35   :  { %221 = vmatpush1.bf16.msra.mxu0 %v1396_v51 }
  0x36   :  { %262 = vmatpush1.bf16.msra.mxu1 %v1400_v52  ;;  %222 = vmatprep.subr.bf16.mxu0 %v1402_v54 }
  0x37   :  { %263 = vmatprep.subr.bf16.mxu1 %v1405_v57 }
  0x39   :  { %223 = vmatpush1.bf16.msra.mxu0 %v1408_v63 }
  0x3a   :  { %264 = vmatpush1.bf16.msra.mxu1 %v1412_v0  ;;  %332 = vmatprep.subr.bf16.mxu0 %v1321_v13 }
  0x3b   :  { %373 = vmatprep.subr.bf16.mxu1 %v1323_v17 }
  0x97   :  { %v143_v21 = vpop.permute.xlu0 %142 }
  0x98   :  { %v166_v23 = vmul.f32 %v149_v11, %v143_v21  ;;  %v167_v25 = vmul.f32 %v1316_v8, %v143_v21  ;;  %v169_v28 = vmul.f32 %v161_v12, %v143_v21  ;;  %v168_v3 = vmul.f32 %v157_v20, %v143_v21 }
  0x9a   :  { %v1428_v30 = vadd.f32 %v174_v14, %v166_v23  ;;  %v1431_v32 = vadd.f32 %v1319_v9, %v167_v25  ;;  %v1435_v41 = vadd.f32 %v186_v29, %v169_v28  ;;  %v1437_v6 = vadd.f32 %v182_v38, %v168_v3 }
  0x9c   :  { %v195_v39 = vmul.f32 0.5, %v1428_v30  ;;  %v196_v8 = vmul.f32 0.5, %v1437_v6 }
  0x9e   :  { %1115 = vtanh.f32 %v195_v39 }
  0x9f   :  { %1117 = vtanh.f32 %v1435_v41 }
  0xa0   :  { %1119 = vtanh.f32 %v196_v8 }
  0xa8   :  { %v1116_v43 = vpop.eup %1115 }
  0xa9   :  { %v199_v45 = vadd.f32 1.0, %v1116_v43  ;;  %v1118_v9 = vpop.eup %1117 }
  0xaa   :  { %v1120_v7 = vpop.eup %1119 }
  0xab   :  { %v201_v46 = vmul.f32 0.5, %v199_v45  ;;  %v200_v50 = vadd.f32 1.0, %v1120_v7 }
  0xad   :  { %v1441_v47 = vmul.f32 %v1118_v9, %v201_v46  ;;  %v202_v55 = vmul.f32 0.5, %v200_v50 }
  0xaf   :  { %1121 = vtanh.f32 %v1441_v47 }
  0xb9   :  { %v1122_v56 = vpop.eup %1121 }
  0xba   :  { %v206_v58 = vmul.f32 %v1122_v56, %v202_v55 }
  0xbc   :  { %v207_v59 = vpack.c.bf16 %v206_v58, %v206_v58 }
  0xbe   :  { %241 = vmatmul.mubr.bf16.vlgmr.msra.gmra.mrb[0].mxu0 %v207_v59  ;;  %282 = vmatmul.mubr.bf16.vlgmr.msra.gmra.mrb[0].mxu1 %v207_v59 }
  0xbf   :  { %333 = vmatpush1.bf16.msra.mxu0 %v1325_v18  ;;  %374 = vmatpush1.bf16.msra.mxu1 %v1328_v22 }
  0xc0   :  { %334 = vmatprep.subr.bf16.mxu0 %v1332_v26  ;;  %375 = vmatprep.subr.bf16.mxu1 %v1334_v27 }
  0xc1   :  { %364 = vmatprep.mubr.bf16.mxu0 %v1244_v2  ;;  %405 = vmatprep.mubr.bf16.mxu1 %v1244_v2 }
  0xc3   :  { %335 = vmatpush1.bf16.msra.mxu0 %v1337_v31  ;;  %376 = vmatpush1.bf16.msra.mxu1 %v1341_v35 }
  0xc4   :  { %336 = vmatprep.subr.bf16.mxu0 %v1343_v36  ;;  %377 = vmatprep.subr.bf16.mxu1 %v1345_v40 }
  0xc7   :  { %337 = vmatpush1.bf16.msra.mxu0 %v1348_v44  ;;  %378 = vmatpush1.bf16.msra.mxu1 %v1352_v48 }
  0xc8   :  { %338 = vmatprep.subr.bf16.mxu0 %v1354_v49  ;;  %379 = vmatprep.subr.bf16.mxu1 %v1357_v53 }
  0xcb   :  { %339 = vmatpush1.bf16.msra.mxu0 %v1360_v60  ;;  %380 = vmatpush1.bf16.msra.mxu1 %v1364_v61 }
  0xcc   :  { %340 = vmatprep.subr.bf16.mxu0 %v1366_v62  ;;  %381 = vmatprep.subr.bf16.mxu1 %v1369_v4 }
  0xcf   :  { %341 = vmatpush1.bf16.msra.mxu0 %v1372_v15  ;;  %382 = vmatpush1.bf16.msra.mxu1 %v1376_v16 }
  0xd0   :  { %342 = vmatprep.subr.bf16.mxu0 %v1378_v19  ;;  %383 = vmatprep.subr.bf16.mxu1 %v1381_v24 }
  0xd3   :  { %343 = vmatpush1.bf16.msra.mxu0 %v1384_v33  ;;  %384 = vmatpush1.bf16.msra.mxu1 %v1388_v34 }
  0xd4   :  { %344 = vmatprep.subr.bf16.mxu0 %v1390_v37  ;;  %385 = vmatprep.subr.bf16.mxu1 %v1393_v42 }
  0xd7   :  { %345 = vmatpush1.bf16.msra.mxu0 %v1396_v51  ;;  %386 = vmatpush1.bf16.msra.mxu1 %v1400_v52 }
  0xd8   :  { %346 = vmatprep.subr.bf16.mxu0 %v1402_v54  ;;  %387 = vmatprep.subr.bf16.mxu1 %v1405_v57 }
  0xdb   :  { %347 = vmatpush1.bf16.msra.mxu0 %v1408_v63  ;;  %388 = vmatpush1.bf16.msra.mxu1 %v1412_v0 }
  0xdc   :  { %455 = vmatprep.subr.bf16.mxu0 %v1321_v13  ;;  %496 = vmatprep.subr.bf16.mxu1 %v1323_v17 }
 0x191   :  { %v242_v1 = vpop.f32.mrb[0].mxu0  ;;  %v283_v5 = vpop.f32.mrb[0].mxu1 }
 0x192   :  { %v294_v10 = vrot.slane %v242_v1, 7  ;;  %v244_v11 = vpop.f32.mrb[1].mxu0  ;;  %v285_v12 = vpop.f32.mrb[1].mxu1  ;;  %v296_v43 = vrot.slane %v283_v5, 7  ;;  %v320_v1 = vrot.slane %v1441_v47, 7 }
 0x193   :  { %v295_v14 = vrot.slane %v244_v11, 7  ;;  %v246_v20 = vpop.f32.mrb[2].mxu0  ;;  %v287_v21 = vpop.f32.mrb[2].mxu1  ;;  %v297_v25 = vrot.slane %v285_v12, 7 }
 0x194   :  { %v302_v23 = vadd.f32 %v294_v10, %v1428_v30  ;;  %v247_v28 = vpop.f32.mrb[3].mxu0  ;;  %v288_v29 = vpop.f32.mrb[3].mxu1  ;;  %v304_v45 = vadd.f32 %v296_v43, %v1437_v6 }
 0x195   :  { %v303_v3 = vadd.f32 %v295_v14, %v1431_v32  ;;  %v305_v8 = vadd.f32 %v297_v25, %v1435_v41 }
 0x196   :  { %v306_v38 = vmul.f32 0.5, %v302_v23  ;;  %v308_v46 = vmul.f32 0.5, %v304_v45 }
 0x197   :  { %v307_v39 = vmul.f32 0.5, %v303_v3 }
 0x198   :  { %1123 = vtanh.f32 %v306_v38 }
 0x199   :  { %1125 = vtanh.f32 %v307_v39 }
 0x19a   :  { %1127 = vtanh.f32 %v305_v8 }
 0x19b   :  { %1129 = vtanh.f32 %v308_v46 }
 0x1a2   :  { %v1124_v9 = vpop.eup %1123 }
 0x1a3   :  { %v312_v7 = vadd.f32 1.0, %v1124_v9  ;;  %v1126_v50 = vpop.eup %1125 }
 0x1a4   :  { %v313_v56 = vadd.f32 1.0, %v1126_v50  ;;  %v1128_v58 = vpop.eup %1127 }
 0x1a5   :  { %v315_v55 = vmul.f32 0.5, %v312_v7  ;;  %v1130_v5 = vpop.eup %1129 }
 0x1a6   :  { %v316_v59 = vmul.f32 0.5, %v313_v56  ;;  %v314_v14 = vadd.f32 1.0, %v1130_v5 }
 0x1a7   :  { %v323_v10 = vmul.f32 %v1128_v58, %v315_v55 }
 0x1a8   :  { %v322_v11 = vmul.f32 %v320_v1, %v316_v59  ;;  %v317_v20 = vmul.f32 0.5, %v314_v14 }
 0x1aa   :  { %v1483_v12 = vadd.f32 %v323_v10, %v322_v11 }
 0x1ac   :  { %1131 = vtanh.f32 %v1483_v12 }
 0x1b6   :  { %v1132_v21 = vpop.eup %1131 }
 0x1b7   :  { %v326_v23 = vmul.f32 %v1132_v21, %v317_v20 }
 0x1b9   :  { %v327_v25 = vpack.c.bf16 %v326_v23, %v326_v23 }
 0x1bb   :  { %v329_v28 = vshrl.u32 %v327_v25, 16 }
 0x1bd   :  { %365 = vmatmul.mubr.bf16.vlgmr.msra.gmra.mrb[4].mxu0 %v329_v28  ;;  %406 = vmatmul.mubr.bf16.vlgmr.msra.gmra.mrb[4].mxu1 %v329_v28 }
 0x1be   :  { %456 = vmatpush1.bf16.msra.mxu0 %v1325_v18  ;;  %497 = vmatpush1.bf16.msra.mxu1 %v1328_v22 }
 0x1bf   :  { %457 = vmatprep.subr.bf16.mxu0 %v1332_v26  ;;  %498 = vmatprep.subr.bf16.mxu1 %v1334_v27 }
 0x1c0   :  { %487 = vmatprep.mubr.bf16.mxu0 %v1244_v2  ;;  %528 = vmatprep.mubr.bf16.mxu1 %v1244_v2 }
 0x1c2   :  { %458 = vmatpush1.bf16.msra.mxu0 %v1337_v31  ;;  %499 = vmatpush1.bf16.msra.mxu1 %v1341_v35 }
 0x1c3   :  { %459 = vmatprep.subr.bf16.mxu0 %v1343_v36  ;;  %500 = vmatprep.subr.bf16.mxu1 %v1345_v40 }
 0x1c6   :  { %460 = vmatpush1.bf16.msra.mxu0 %v1348_v44  ;;  %501 = vmatpush1.bf16.msra.mxu1 %v1352_v48 }
 0x1c7   :  { %461 = vmatprep.subr.bf16.mxu0 %v1354_v49  ;;  %502 = vmatprep.subr.bf16.mxu1 %v1357_v53 }
 0x1ca   :  { %462 = vmatpush1.bf16.msra.mxu0 %v1360_v60  ;;  %503 = vmatpush1.bf16.msra.mxu1 %v1364_v61 }
 0x1cb   :  { %463 = vmatprep.subr.bf16.mxu0 %v1366_v62  ;;  %504 = vmatprep.subr.bf16.mxu1 %v1369_v4 }
 0x1ce   :  { %464 = vmatpush1.bf16.msra.mxu0 %v1372_v15  ;;  %505 = vmatpush1.bf16.msra.mxu1 %v1376_v16 }
 0x1cf   :  { %465 = vmatprep.subr.bf16.mxu0 %v1378_v19  ;;  %506 = vmatprep.subr.bf16.mxu1 %v1381_v24 }
 0x1d2   :  { %466 = vmatpush1.bf16.msra.mxu0 %v1384_v33  ;;  %507 = vmatpush1.bf16.msra.mxu1 %v1388_v34 }
 0x1d3   :  { %467 = vmatprep.subr.bf16.mxu0 %v1390_v37  ;;  %508 = vmatprep.subr.bf16.mxu1 %v1393_v42 }
 0x1d6   :  { %468 = vmatpush1.bf16.msra.mxu0 %v1396_v51  ;;  %509 = vmatpush1.bf16.msra.mxu1 %v1400_v52 }
 0x1d7   :  { %469 = vmatprep.subr.bf16.mxu0 %v1402_v54  ;;  %510 = vmatprep.subr.bf16.mxu1 %v1405_v57 }
 0x1da   :  { %470 = vmatpush1.bf16.msra.mxu0 %v1408_v63  ;;  %511 = vmatpush1.bf16.msra.mxu1 %v1412_v0 }
 0x1db   :  { %580 = vmatprep.subr.bf16.mxu0 %v1321_v13  ;;  %621 = vmatprep.subr.bf16.mxu1 %v1323_v17 }
 0x290   :  { %v366_v47 = vpop.f32.mrb[4].mxu0  ;;  %v407_v29 = vpop.f32.mrb[4].mxu1 }
 0x291   :  { %v418_v3 = vrot.slane %v366_v47, 6  ;;  %v368_v38 = vpop.f32.mrb[5].mxu0  ;;  %v409_v39 = vpop.f32.mrb[5].mxu1  ;;  %v420_v1 = vrot.slane %v407_v29, 6  ;;  %v444_v47 = vrot.slane %v1483_v12, 7 }
 0x292   :  { %v419_v8 = vrot.slane %v368_v38, 6  ;;  %v370_v43 = vpop.f32.mrb[6].mxu0  ;;  %v411_v45 = vpop.f32.mrb[6].mxu1  ;;  %v421_v9 = vrot.slane %v409_v39, 6 }
 0x293   :  { %v426_v46 = vadd.f32 %v418_v3, %v1428_v30  ;;  %v371_v7 = vpop.f32.mrb[7].mxu0  ;;  %v412_v50 = vpop.f32.mrb[7].mxu1  ;;  %v428_v10 = vadd.f32 %v420_v1, %v1437_v6 }
 0x294   :  { %v427_v55 = vadd.f32 %v419_v8, %v1431_v32  ;;  %v429_v59 = vadd.f32 %v421_v9, %v1435_v41 }
 0x295   :  { %v430_v56 = vmul.f32 0.5, %v426_v46  ;;  %v432_v11 = vmul.f32 0.5, %v428_v10 }
 0x296   :  { %v431_v58 = vmul.f32 0.5, %v427_v55 }
 0x297   :  { %1133 = vtanh.f32 %v430_v56 }
 0x298   :  { %1135 = vtanh.f32 %v431_v58 }
 0x299   :  { %1137 = vtanh.f32 %v429_v59 }
 0x29a   :  { %1139 = vtanh.f32 %v432_v11 }
 0x2a1   :  { %v1134_v5 = vpop.eup %1133 }
 0x2a2   :  { %v436_v14 = vadd.f32 1.0, %v1134_v5  ;;  %v1136_v20 = vpop.eup %1135 }
 0x2a3   :  { %v437_v23 = vadd.f32 1.0, %v1136_v20  ;;  %v1138_v25 = vpop.eup %1137 }
 0x2a4   :  { %v439_v21 = vmul.f32 0.5, %v436_v14  ;;  %v1140_v29 = vpop.eup %1139 }
 0x2a5   :  { %v440_v28 = vmul.f32 0.5, %v437_v23  ;;  %v438_v8 = vadd.f32 1.0, %v1140_v29 }
 0x2a6   :  { %v447_v3 = vmul.f32 %v1138_v25, %v439_v21 }
 0x2a7   :  { %v446_v38 = vmul.f32 %v444_v47, %v440_v28  ;;  %v441_v43 = vmul.f32 0.5, %v438_v8 }
 0x2a9   :  { %v1525_v39 = vadd.f32 %v447_v3, %v446_v38 }
 0x2ab   :  { %1141 = vtanh.f32 %v1525_v39 }
 0x2b5   :  { %v1142_v45 = vpop.eup %1141 }
 0x2b6   :  { %v450_v46 = vmul.f32 %v1142_v45, %v441_v43 }
 0x2b8   :  { %v451_v9 = vpack.c.bf16 %v450_v46, %v450_v46 }
 0x2ba   :  { %v453_v7 = vrot.slane %v451_v9, 1 }
 0x2bc   :  { %488 = vmatmul.mubr.bf16.vlgmr.msra.gmra.mrb[8].mxu0 %v453_v7  ;;  %529 = vmatmul.mubr.bf16.vlgmr.msra.gmra.mrb[8].mxu1 %v453_v7 }
 0x2bd   :  { %581 = vmatpush1.bf16.msra.mxu0 %v1325_v18  ;;  %622 = vmatpush1.bf16.msra.mxu1 %v1328_v22 }
 0x2be   :  { %582 = vmatprep.subr.bf16.mxu0 %v1332_v26  ;;  %623 = vmatprep.subr.bf16.mxu1 %v1334_v27 }
 0x2bf   :  { %612 = vmatprep.mubr.bf16.mxu0 %v1244_v2  ;;  %653 = vmatprep.mubr.bf16.mxu1 %v1244_v2 }
 0x2c1   :  { %583 = vmatpush1.bf16.msra.mxu0 %v1337_v31  ;;  %624 = vmatpush1.bf16.msra.mxu1 %v1341_v35 }
 0x2c2   :  { %584 = vmatprep.subr.bf16.mxu0 %v1343_v36  ;;  %625 = vmatprep.subr.bf16.mxu1 %v1345_v40 }
 0x2c5   :  { %585 = vmatpush1.bf16.msra.mxu0 %v1348_v44  ;;  %626 = vmatpush1.bf16.msra.mxu1 %v1352_v48 }
 0x2c6   :  { %586 = vmatprep.subr.bf16.mxu0 %v1354_v49  ;;  %627 = vmatprep.subr.bf16.mxu1 %v1357_v53 }
 0x2c9   :  { %587 = vmatpush1.bf16.msra.mxu0 %v1360_v60  ;;  %628 = vmatpush1.bf16.msra.mxu1 %v1364_v61 }
 0x2ca   :  { %588 = vmatprep.subr.bf16.mxu0 %v1366_v62  ;;  %629 = vmatprep.subr.bf16.mxu1 %v1369_v4 }
 0x2cd   :  { %589 = vmatpush1.bf16.msra.mxu0 %v1372_v15  ;;  %630 = vmatpush1.bf16.msra.mxu1 %v1376_v16 }
 0x2ce   :  { %590 = vmatprep.subr.bf16.mxu0 %v1378_v19  ;;  %631 = vmatprep.subr.bf16.mxu1 %v1381_v24 }
 0x2d1   :  { %591 = vmatpush1.bf16.msra.mxu0 %v1384_v33  ;;  %632 = vmatpush1.bf16.msra.mxu1 %v1388_v34 }
 0x2d2   :  { %592 = vmatprep.subr.bf16.mxu0 %v1390_v37  ;;  %633 = vmatprep.subr.bf16.mxu1 %v1393_v42 }
 0x2d5   :  { %593 = vmatpush1.bf16.msra.mxu0 %v1396_v51  ;;  %634 = vmatpush1.bf16.msra.mxu1 %v1400_v52 }
 0x2d6   :  { %594 = vmatprep.subr.bf16.mxu0 %v1402_v54  ;;  %635 = vmatprep.subr.bf16.mxu1 %v1405_v57 }
 0x2d9   :  { %595 = vmatpush1.bf16.msra.mxu0 %v1408_v63  ;;  %636 = vmatpush1.bf16.msra.mxu1 %v1412_v0 }
 0x2da   :  { %703 = vmatprep.subr.bf16.mxu0 %v1321_v13  ;;  %744 = vmatprep.subr.bf16.mxu1 %v1323_v17 }
 0x38f   :  { %v489_v12 = vpop.f32.mrb[8].mxu0  ;;  %v530_v50 = vpop.f32.mrb[8].mxu1 }
 0x390   :  { %v541_v55 = vrot.slane %v489_v12, 5  ;;  %v491_v56 = vpop.f32.mrb[9].mxu0  ;;  %v532_v58 = vpop.f32.mrb[9].mxu1  ;;  %v543_v47 = vrot.slane %v530_v50, 5  ;;  %v567_v12 = vrot.slane %v1525_v39, 7 }
 0x391   :  { %v542_v59 = vrot.slane %v491_v56, 5  ;;  %v493_v1 = vpop.f32.mrb[10].mxu0  ;;  %v534_v10 = vpop.f32.mrb[10].mxu1  ;;  %v544_v5 = vrot.slane %v532_v58, 5 }
 0x392   :  { %v549_v11 = vadd.f32 %v541_v55, %v1428_v30  ;;  %v494_v14 = vpop.f32.mrb[11].mxu0  ;;  %v535_v20 = vpop.f32.mrb[11].mxu1  ;;  %v551_v3 = vadd.f32 %v543_v47, %v1437_v6 }
 0x393   :  { %v550_v21 = vadd.f32 %v542_v59, %v1431_v32  ;;  %v552_v28 = vadd.f32 %v544_v5, %v1435_v41 }
 0x394   :  { %v553_v23 = vmul.f32 0.5, %v549_v11  ;;  %v555_v38 = vmul.f32 0.5, %v551_v3 }
 0x395   :  { %v554_v25 = vmul.f32 0.5, %v550_v21 }
 0x396   :  { %1143 = vtanh.f32 %v553_v23 }
 0x397   :  { %1145 = vtanh.f32 %v554_v25 }
 0x398   :  { %1147 = vtanh.f32 %v552_v28 }
 0x399   :  { %1149 = vtanh.f32 %v555_v38 }
 0x3a0   :  { %v1144_v29 = vpop.eup %1143 }
 0x3a1   :  { %v559_v8 = vadd.f32 1.0, %v1144_v29  ;;  %v1146_v43 = vpop.eup %1145 }
 0x3a2   :  { %v560_v46 = vadd.f32 1.0, %v1146_v43  ;;  %v1148_v9 = vpop.eup %1147 }
 0x3a3   :  { %v562_v45 = vmul.f32 0.5, %v559_v8  ;;  %v1150_v50 = vpop.eup %1149 }
 0x3a4   :  { %v563_v7 = vmul.f32 0.5, %v560_v46  ;;  %v561_v59 = vadd.f32 1.0, %v1150_v50 }
 0x3a5   :  { %v570_v55 = vmul.f32 %v1148_v9, %v562_v45 }
 0x3a6   :  { %v569_v56 = vmul.f32 %v567_v12, %v563_v7  ;;  %v564_v1 = vmul.f32 0.5, %v561_v59 }
 0x3a8   :  { %v1567_v58 = vadd.f32 %v570_v55, %v569_v56 }
 0x3aa   :  { %1151 = vtanh.f32 %v1567_v58 }
 0x3b4   :  { %v1152_v10 = vpop.eup %1151 }
 0x3b5   :  { %v573_v11 = vmul.f32 %v1152_v10, %v564_v1 }
 0x3b7   :  { %v574_v5 = vpack.c.bf16 %v573_v11, %v573_v11 }
 0x3b9   :  { %v576_v14 = vshrl.u32 %v574_v5, 16 }
 0x3bb   :  { %v578_v20 = vrot.slane %v576_v14, 1 }
 0x3bd   :  { %613 = vmatmul.mubr.bf16.vlgmr.msra.gmra.mrb[12].mxu0 %v578_v20  ;;  %654 = vmatmul.mubr.bf16.vlgmr.msra.gmra.mrb[12].mxu1 %v578_v20 }
 0x3be   :  { %704 = vmatpush1.bf16.msra.mxu0 %v1325_v18  ;;  %745 = vmatpush1.bf16.msra.mxu1 %v1328_v22 }
 0x3bf   :  { %705 = vmatprep.subr.bf16.mxu0 %v1332_v26  ;;  %746 = vmatprep.subr.bf16.mxu1 %v1334_v27 }
 0x3c0   :  { %735 = vmatprep.mubr.bf16.mxu0 %v1244_v2  ;;  %776 = vmatprep.mubr.bf16.mxu1 %v1244_v2 }
 0x3c2   :  { %706 = vmatpush1.bf16.msra.mxu0 %v1337_v31  ;;  %747 = vmatpush1.bf16.msra.mxu1 %v1341_v35 }
 0x3c3   :  { %707 = vmatprep.subr.bf16.mxu0 %v1343_v36  ;;  %748 = vmatprep.subr.bf16.mxu1 %v1345_v40 }
 0x3c6   :  { %708 = vmatpush1.bf16.msra.mxu0 %v1348_v44  ;;  %749 = vmatpush1.bf16.msra.mxu1 %v1352_v48 }
 0x3c7   :  { %709 = vmatprep.subr.bf16.mxu0 %v1354_v49  ;;  %750 = vmatprep.subr.bf16.mxu1 %v1357_v53 }
 0x3ca   :  { %710 = vmatpush1.bf16.msra.mxu0 %v1360_v60  ;;  %751 = vmatpush1.bf16.msra.mxu1 %v1364_v61 }
 0x3cb   :  { %711 = vmatprep.subr.bf16.mxu0 %v1366_v62  ;;  %752 = vmatprep.subr.bf16.mxu1 %v1369_v4 }
 0x3ce   :  { %712 = vmatpush1.bf16.msra.mxu0 %v1372_v15  ;;  %753 = vmatpush1.bf16.msra.mxu1 %v1376_v16 }
 0x3cf   :  { %713 = vmatprep.subr.bf16.mxu0 %v1378_v19  ;;  %754 = vmatprep.subr.bf16.mxu1 %v1381_v24 }
 0x3d2   :  { %714 = vmatpush1.bf16.msra.mxu0 %v1384_v33  ;;  %755 = vmatpush1.bf16.msra.mxu1 %v1388_v34 }
 0x3d3   :  { %715 = vmatprep.subr.bf16.mxu0 %v1390_v37  ;;  %756 = vmatprep.subr.bf16.mxu1 %v1393_v42 }
 0x3d6   :  { %716 = vmatpush1.bf16.msra.mxu0 %v1396_v51  ;;  %757 = vmatpush1.bf16.msra.mxu1 %v1400_v52 }
 0x3d7   :  { %717 = vmatprep.subr.bf16.mxu0 %v1402_v54  ;;  %758 = vmatprep.subr.bf16.mxu1 %v1405_v57 }
 0x3da   :  { %718 = vmatpush1.bf16.msra.mxu0 %v1408_v63  ;;  %759 = vmatpush1.bf16.msra.mxu1 %v1412_v0 }
 0x3db   :  { %828 = vmatprep.subr.bf16.mxu0 %v1321_v13  ;;  %869 = vmatprep.subr.bf16.mxu1 %v1323_v17 }
 0x490   :  { %v614_v39 = vpop.f32.mrb[12].mxu0  ;;  %v655_v21 = vpop.f32.mrb[12].mxu1 }
 0x491   :  { %v666_v23 = vrot.slane %v614_v39, 4  ;;  %v616_v25 = vpop.f32.mrb[13].mxu0  ;;  %v657_v28 = vpop.f32.mrb[13].mxu1  ;;  %v668_v55 = vrot.slane %v655_v21, 4  ;;  %v692_v39 = vrot.slane %v1567_v58, 7 }
 0x492   :  { %v667_v47 = vrot.slane %v616_v25, 4  ;;  %v618_v3 = vpop.f32.mrb[14].mxu0  ;;  %v659_v38 = vpop.f32.mrb[14].mxu1  ;;  %v669_v8 = vrot.slane %v657_v28, 4 }
 0x493   :  { %v674_v29 = vadd.f32 %v666_v23, %v1428_v30  ;;  %v619_v43 = vpop.f32.mrb[15].mxu0  ;;  %v660_v45 = vpop.f32.mrb[15].mxu1  ;;  %v676_v56 = vadd.f32 %v668_v55, %v1437_v6 }
 0x494   :  { %v675_v46 = vadd.f32 %v667_v47, %v1431_v32  ;;  %v677_v12 = vadd.f32 %v669_v8, %v1435_v41 }
 0x495   :  { %v678_v9 = vmul.f32 0.5, %v674_v29  ;;  %v680_v50 = vmul.f32 0.5, %v676_v56 }
 0x496   :  { %v679_v7 = vmul.f32 0.5, %v675_v46 }
 0x497   :  { %1153 = vtanh.f32 %v678_v9 }
 0x498   :  { %1155 = vtanh.f32 %v679_v7 }
 0x499   :  { %1157 = vtanh.f32 %v677_v12 }
 0x49a   :  { %1159 = vtanh.f32 %v680_v50 }
 0x4a1   :  { %v1154_v59 = vpop.eup %1153 }
 0x4a2   :  { %v684_v1 = vadd.f32 1.0, %v1154_v59  ;;  %v1156_v10 = vpop.eup %1155 }
 0x4a3   :  { %v685_v5 = vadd.f32 1.0, %v1156_v10  ;;  %v1158_v14 = vpop.eup %1157 }
 0x4a4   :  { %v687_v11 = vmul.f32 0.5, %v684_v1  ;;  %v1160_v21 = vpop.eup %1159 }
 0x4a5   :  { %v688_v20 = vmul.f32 0.5, %v685_v5  ;;  %v686_v47 = vadd.f32 1.0, %v1160_v21 }
 0x4a6   :  { %v695_v23 = vmul.f32 %v1158_v14, %v687_v11 }
 0x4a7   :  { %v694_v25 = vmul.f32 %v692_v39, %v688_v20  ;;  %v689_v3 = vmul.f32 0.5, %v686_v47 }
 0x4a9   :  { %v1609_v28 = vadd.f32 %v695_v23, %v694_v25 }
 0x4ab   :  { %1161 = vtanh.f32 %v1609_v28 }
 0x4b5   :  { %v1162_v38 = vpop.eup %1161 }
 0x4b6   :  { %v698_v29 = vmul.f32 %v1162_v38, %v689_v3 }
 0x4b8   :  { %v699_v8 = vpack.c.bf16 %v698_v29, %v698_v29 }
 0x4ba   :  { %v701_v43 = vrot.slane %v699_v8, 2  ;;  %v815_v8 = vrot.slane %v1609_v28, 7 }
 0x4bc   :  { %736 = vmatmul.mubr.bf16.vlgmr.msra.gmra.mrb[16].mxu0 %v701_v43  ;;  %777 = vmatmul.mubr.bf16.vlgmr.msra.gmra.mrb[16].mxu1 %v701_v43 }
 0x4bd   :  { %829 = vmatpush1.bf16.msra.mxu0 %v1325_v18  ;;  %870 = vmatpush1.bf16.msra.mxu1 %v1328_v22 }
 0x4be   :  { %830 = vmatprep.subr.bf16.mxu0 %v1332_v26  ;;  %871 = vmatprep.subr.bf16.mxu1 %v1334_v27 }
 0x4bf   :  { %860 = vmatprep.mubr.bf16.mxu0 %v1244_v2  ;;  %901 = vmatprep.mubr.bf16.mxu1 %v1244_v2 }
 0x4c1   :  { %831 = vmatpush1.bf16.msra.mxu0 %v1337_v31  ;;  %872 = vmatpush1.bf16.msra.mxu1 %v1341_v35 }
 0x4c2   :  { %832 = vmatprep.subr.bf16.mxu0 %v1343_v36  ;;  %873 = vmatprep.subr.bf16.mxu1 %v1345_v40 }
 0x4c5   :  { %833 = vmatpush1.bf16.msra.mxu0 %v1348_v44  ;;  %874 = vmatpush1.bf16.msra.mxu1 %v1352_v48 }
 0x4c6   :  { %834 = vmatprep.subr.bf16.mxu0 %v1354_v49  ;;  %875 = vmatprep.subr.bf16.mxu1 %v1357_v53 }
 0x4c9   :  { %835 = vmatpush1.bf16.msra.mxu0 %v1360_v60  ;;  %876 = vmatpush1.bf16.msra.mxu1 %v1364_v61 }
 0x4ca   :  { %836 = vmatprep.subr.bf16.mxu0 %v1366_v62  ;;  %877 = vmatprep.subr.bf16.mxu1 %v1369_v4 }
 0x4cd   :  { %837 = vmatpush1.bf16.msra.mxu0 %v1372_v15  ;;  %878 = vmatpush1.bf16.msra.mxu1 %v1376_v16 }
 0x4ce   :  { %838 = vmatprep.subr.bf16.mxu0 %v1378_v19  ;;  %879 = vmatprep.subr.bf16.mxu1 %v1381_v24 }
 0x4d1   :  { %839 = vmatpush1.bf16.msra.mxu0 %v1384_v33  ;;  %880 = vmatpush1.bf16.msra.mxu1 %v1388_v34 }
 0x4d2   :  { %840 = vmatprep.subr.bf16.mxu0 %v1390_v37  ;;  %881 = vmatprep.subr.bf16.mxu1 %v1393_v42 }
 0x4d5   :  { %841 = vmatpush1.bf16.msra.mxu0 %v1396_v51  ;;  %882 = vmatpush1.bf16.msra.mxu1 %v1400_v52 }
 0x4d6   :  { %842 = vmatprep.subr.bf16.mxu0 %v1402_v54  ;;  %883 = vmatprep.subr.bf16.mxu1 %v1405_v57 }
 0x4d9   :  { %843 = vmatpush1.bf16.msra.mxu0 %v1408_v63  ;;  %884 = vmatpush1.bf16.msra.mxu1 %v1412_v0 }
 0x4da   :  { %951 = vmatprep.subr.bf16.mxu0 %v1321_v13  ;;  %992 = vmatprep.subr.bf16.mxu1 %v1323_v17 }
 0x58f   :  { %v737_v58 = vpop.f32.mrb[16].mxu0  ;;  %v778_v45 = vpop.f32.mrb[16].mxu1 }
 0x590   :  { %v789_v46 = vrot.slane %v737_v58, 3  ;;  %v739_v9 = vpop.f32.mrb[17].mxu0  ;;  %v780_v7 = vpop.f32.mrb[17].mxu1  ;;  %v791_v17 = vrot.slane %v778_v45, 3 }
 0x591   :  { %v790_v12 = vrot.slane %v739_v9, 3  ;;  %v741_v55 = vpop.f32.mrb[18].mxu0  ;;  %v782_v56 = vpop.f32.mrb[18].mxu1  ;;  %v792_v59 = vrot.slane %v780_v7, 3 }
 0x592   :  { %v797_v50 = vadd.f32 %v789_v46, %v1428_v30  ;;  %v742_v1 = vpop.f32.mrb[19].mxu0  ;;  %v783_v10 = vpop.f32.mrb[19].mxu1  ;;  %v799_v20 = vadd.f32 %v791_v17, %v1437_v6 }
 0x593   :  { %v798_v11 = vadd.f32 %v790_v12, %v1431_v32  ;;  %v800_v13 = vadd.f32 %v792_v59, %v1435_v41 }
 0x594   :  { %v801_v5 = vmul.f32 0.5, %v797_v50  ;;  %v803_v39 = vmul.f32 0.5, %v799_v20 }
 0x595   :  { %v802_v14 = vmul.f32 0.5, %v798_v11 }
 0x596   :  { %1163 = vtanh.f32 %v801_v5 }
 0x597   :  { %1165 = vtanh.f32 %v802_v14 }
 0x598   :  { %1167 = vtanh.f32 %v800_v13 }
 0x599   :  { %1169 = vtanh.f32 %v803_v39 }
 0x5a0   :  { %v1164_v23 = vpop.eup %1163 }
 0x5a1   :  { %v807_v25 = vadd.f32 1.0, %v1164_v23  ;;  %v1166_v21 = vpop.eup %1165 }
 0x5a2   :  { %v808_v3 = vadd.f32 1.0, %v1166_v21  ;;  %v1168_v38 = vpop.eup %1167 }
 0x5a3   :  { %v810_v47 = vmul.f32 0.5, %v807_v25  ;;  %v1170_v45 = vpop.eup %1169 }
 0x5a4   :  { %v811_v29 = vmul.f32 0.5, %v808_v3  ;;  %v809_v9 = vadd.f32 1.0, %v1170_v45 }
 0x5a5   :  { %v818_v43 = vmul.f32 %v1168_v38, %v810_v47 }
 0x5a6   :  { %v817_v58 = vmul.f32 %v815_v8, %v811_v29  ;;  %v812_v7 = vmul.f32 0.5, %v809_v9 }
 0x5a8   :  { %v1651_v46 = vadd.f32 %v818_v43, %v817_v58 }
 0x5aa   :  { %1171 = vtanh.f32 %v1651_v46 }
 0x5b4   :  { %v1172_v12 = vpop.eup %1171 }
 0x5b5   :  { %v821_v55 = vmul.f32 %v1172_v12, %v812_v7 }
 0x5b7   :  { %v822_v56 = vpack.c.bf16 %v821_v55, %v821_v55 }
 0x5b9   :  { %v824_v50 = vshrl.u32 %v822_v56, 16 }
 0x5bb   :  { %v826_v59 = vrot.slane %v824_v50, 2 }
 0x5bd   :  { %861 = vmatmul.mubr.bf16.vlgmr.msra.gmra.mrb[20].mxu0 %v826_v59  ;;  %902 = vmatmul.mubr.bf16.vlgmr.msra.gmra.mrb[20].mxu1 %v826_v59 }
 0x5be   :  { %952 = vmatpush1.bf16.msra.mxu0 %v1325_v18  ;;  %993 = vmatpush1.bf16.msra.mxu1 %v1328_v22 }
 0x5bf   :  { %953 = vmatprep.subr.bf16.mxu0 %v1332_v26  ;;  %994 = vmatprep.subr.bf16.mxu1 %v1334_v27 }
 0x5c0   :  { %983 = vmatprep.mubr.bf16.mxu0 %v1244_v2  ;;  %1024 = vmatprep.mubr.bf16.mxu1 %v1244_v2 }
 0x5c2   :  { %954 = vmatpush1.bf16.msra.mxu0 %v1337_v31  ;;  %995 = vmatpush1.bf16.msra.mxu1 %v1341_v35 }
 0x5c3   :  { %955 = vmatprep.subr.bf16.mxu0 %v1343_v36  ;;  %996 = vmatprep.subr.bf16.mxu1 %v1345_v40 }
 0x5c6   :  { %956 = vmatpush1.bf16.msra.mxu0 %v1348_v44  ;;  %997 = vmatpush1.bf16.msra.mxu1 %v1352_v48 }
 0x5c7   :  { %957 = vmatprep.subr.bf16.mxu0 %v1354_v49  ;;  %998 = vmatprep.subr.bf16.mxu1 %v1357_v53 }
 0x5ca   :  { %958 = vmatpush1.bf16.msra.mxu0 %v1360_v60  ;;  %999 = vmatpush1.bf16.msra.mxu1 %v1364_v61 }
 0x5cb   :  { %959 = vmatprep.subr.bf16.mxu0 %v1366_v62  ;;  %1000 = vmatprep.subr.bf16.mxu1 %v1369_v4 }
 0x5ce   :  { %960 = vmatpush1.bf16.msra.mxu0 %v1372_v15  ;;  %1001 = vmatpush1.bf16.msra.mxu1 %v1376_v16 }
 0x5cf   :  { %961 = vmatprep.subr.bf16.mxu0 %v1378_v19  ;;  %1002 = vmatprep.subr.bf16.mxu1 %v1381_v24 }
 0x5d2   :  { %962 = vmatpush1.bf16.msra.mxu0 %v1384_v33  ;;  %1003 = vmatpush1.bf16.msra.mxu1 %v1388_v34 }
 0x5d3   :  { %963 = vmatprep.subr.bf16.mxu0 %v1390_v37  ;;  %1004 = vmatprep.subr.bf16.mxu1 %v1393_v42 }
 0x5d6   :  { %964 = vmatpush1.bf16.msra.mxu0 %v1396_v51  ;;  %1005 = vmatpush1.bf16.msra.mxu1 %v1400_v52  ;;  %v940_v52 = vrot.slane %v1651_v46, 7 }
 0x5d7   :  { %965 = vmatprep.subr.bf16.mxu0 %v1402_v54  ;;  %1006 = vmatprep.subr.bf16.mxu1 %v1405_v57 }
 0x5da   :  { %966 = vmatpush1.bf16.msra.mxu0 %v1408_v63  ;;  %1007 = vmatpush1.bf16.msra.mxu1 %v1412_v0 }
 0x690   :  { %v862_v2 = vpop.f32.mrb[20].mxu0  ;;  %v903_v18 = vpop.f32.mrb[20].mxu1 }
 0x691   :  { %v914_v22 = vrot.slane %v862_v2, 2  ;;  %v864_v26 = vpop.f32.mrb[21].mxu0  ;;  %v905_v27 = vpop.f32.mrb[21].mxu1  ;;  %v916_v4 = vrot.slane %v903_v18, 2 }
 0x692   :  { %v915_v31 = vrot.slane %v864_v26, 2  ;;  %v866_v35 = vpop.f32.mrb[22].mxu0  ;;  %v907_v36 = vpop.f32.mrb[22].mxu1  ;;  %v917_v44 = vrot.slane %v905_v27, 2 }
 0x693   :  { %v922_v40 = vadd.f32 %v914_v22, %v1428_v30  ;;  %v867_v48 = vpop.f32.mrb[23].mxu0  ;;  %v908_v49 = vpop.f32.mrb[23].mxu1  ;;  %v924_v15 = vadd.f32 %v916_v4, %v1437_v6 }
 0x694   :  { %v923_v53 = vadd.f32 %v915_v31, %v1431_v32  ;;  %v925_v62 = vadd.f32 %v917_v44, %v1435_v41  ;;  %v1108_v49 = vld [vmem:[#allocation2] ss:$0 sm:$0xff] }
 0x695   :  { %v926_v60 = vmul.f32 0.5, %v922_v40  ;;  %v928_v16 = vmul.f32 0.5, %v924_v15 }
 0x696   :  { %v927_v61 = vmul.f32 0.5, %v923_v53 }
 0x697   :  { %1173 = vtanh.f32 %v926_v60 }
 0x698   :  { %1175 = vtanh.f32 %v927_v61 }
 0x699   :  { %1177 = vtanh.f32 %v925_v62 }
 0x69a   :  { %1179 = vtanh.f32 %v928_v16 }
 0x6a1   :  { %v1174_v19 = vpop.eup %1173 }
 0x6a2   :  { %v932_v24 = vadd.f32 1.0, %v1174_v19  ;;  %v1176_v33 = vpop.eup %1175 }
 0x6a3   :  { %v933_v37 = vadd.f32 1.0, %v1176_v33  ;;  %v1178_v42 = vpop.eup %1177 }
 0x6a4   :  { %v935_v34 = vmul.f32 0.5, %v932_v24  ;;  %v1180_v0 = vpop.eup %1179 }
 0x6a5   :  { %v936_v51 = vmul.f32 0.5, %v933_v37  ;;  %v934_v28 = vadd.f32 1.0, %v1180_v0 }
 0x6a6   :  { %v943_v54 = vmul.f32 %v1178_v42, %v935_v34 }
 0x6a7   :  { %v942_v57 = vmul.f32 %v940_v52, %v936_v51  ;;  %v937_v1 = vmul.f32 0.5, %v934_v28 }
 0x6a9   :  { %v944_v63 = vadd.f32 %v943_v54, %v942_v57 }
 0x6ab   :  { %1181 = vtanh.f32 %v944_v63 }
 0x6b5   :  { %v1182_v10 = vpop.eup %1181 }
 0x6b6   :  { %v946_v11 = vmul.f32 %v1182_v10, %v937_v1 }
 0x6b8   :  { %v947_v5 = vpack.c.bf16 %v946_v11, %v946_v11 }
 0x6ba   :  { %v949_v14 = vrot.slane %v947_v5, 3 }
 0x6bc   :  { %984 = vmatmul.mubr.bf16.vlgmr.msra.gmra.mrb[24].mxu0 %v949_v14  ;;  %1025 = vmatmul.mubr.bf16.vlgmr.msra.gmra.mrb[24].mxu1 %v949_v14 }
 0x78f   :  { %v985_v13 = vpop.f32.mrb[24].mxu0  ;;  %v1026_v17 = vpop.f32.mrb[24].mxu1 }
 0x790   :  { %v1037_v20 = vrot.slane %v985_v13, 1  ;;  %v987_v39 = vpop.f32.mrb[25].mxu0  ;;  %v1028_v23 = vpop.f32.mrb[25].mxu1  ;;  %v1039_v9 = vrot.slane %v1026_v17, 1 }
 0x791   :  { %v1038_v25 = vrot.slane %v987_v39, 1  ;;  %v989_v21 = vpop.f32.mrb[26].mxu0  ;;  %v1030_v47 = vpop.f32.mrb[26].mxu1  ;;  %v1040_v38 = vrot.slane %v1028_v23, 1 }
 0x792   :  { %v1045_v3 = vadd.f32 %v1037_v20, %v1428_v30  ;;  %v990_v29 = vpop.f32.mrb[27].mxu0  ;;  %v1031_v8 = vpop.f32.mrb[27].mxu1  ;;  %v1047_v7 = vadd.f32 %v1039_v9, %v1437_v6  ;;  %v1107_v6 = vld [vmem:[%s1714_s4] ss:$0 sm:$0xff] }
 0x793   :  { %v1046_v43 = vadd.f32 %v1038_v25, %v1431_v32  ;;  %v1048_v45 = vadd.f32 %v1040_v38, %v1435_v41  ;;  %v1063_v32 = vrot.slane %v944_v63, 7 }
 0x794   :  { %v1049_v58 = vmul.f32 0.5, %v1045_v3  ;;  %v1051_v12 = vmul.f32 0.5, %v1047_v7 }
 0x795   :  { %v1050_v46 = vmul.f32 0.5, %v1046_v43 }
 0x796   :  { %1183 = vtanh.f32 %v1049_v58 }
 0x797   :  { %1185 = vtanh.f32 %v1050_v46 }
 0x798   :  { %1187 = vtanh.f32 %v1048_v45 }
 0x799   :  { %1189 = vtanh.f32 %v1051_v12 }
 0x7a0   :  { %v1184_v55 = vpop.eup %1183 }
 0x7a1   :  { %v1055_v56 = vadd.f32 1.0, %v1184_v55  ;;  %v1186_v50 = vpop.eup %1185 }
 0x7a2   :  { %v1056_v59 = vadd.f32 1.0, %v1186_v50  ;;  %v1188_v2 = vpop.eup %1187 }
 0x7a3   :  { %v1058_v30 = vmul.f32 0.5, %v1055_v56  ;;  %v1190_v41 = vpop.eup %1189 }
 0x7a4   :  { %v1059_v18 = vmul.f32 0.5, %v1056_v59  ;;  %v1057_v31 = vadd.f32 1.0, %v1190_v41 }
 0x7a5   :  { %v1066_v22 = vmul.f32 %v1188_v2, %v1058_v30 }
 0x7a6   :  { %v1065_v26 = vmul.f32 %v1063_v32, %v1059_v18  ;;  %v1060_v35 = vmul.f32 0.5, %v1057_v31 }
 0x7a8   :  { %v1067_v27 = vadd.f32 %v1066_v22, %v1065_v26 }
 0x7aa   :  { %1191 = vtanh.f32 %v1067_v27 }
 0x7b4   :  { %v1192_v36 = vpop.eup %1191 }
 0x7b5   :  { %v1069_v40 = vmul.f32 %v1192_v36, %v1060_v35 }
 0x7b7   :  { %v1077_v44 = vmul.f32 %v1107_v6, %v1069_v40 }
 0x7b9   :  { %v1079_v48 = vsel %vm1078_vm0, %v1077_v44, 0.0 }
 0x7ba   :  { %1080 = vadd.xlane.f32.xlu0 %v1079_v48 }
 0x847   :  { %v1081_v53 = vpop.xlane.xlu0 %1080 }
 0x848   :  { %v1089_v60 = vadd.f32 %v1108_v49, %v1081_v53 }
 0x84a   :  { %1091 = vst.msk [vmem:[#allocation6 - $0x7] sm:$0x80] %vm1090_vm1, %v1089_v60 }
 0x84b   :  { %1226 = shalt.err (!%p1223_p12)
}
 0x84c   :  { %s1227_s21 = scalar_lea.hbm %s1716_s6, 16 }
 0x84d   :  { %p1228_p13 = scmp.ne.s32.totalorder %s1716_s6, %s1227_s21  ;;  %p1231_p0 = scmp.lt.u32.totalorder %s1227_s21, %s1716_s6 }
 0x84f   :  { %p1233_p1 = pnand %p1231_p0, %p1228_p13 }
 0x851   :  { %1236 = shalt.err (!%p1233_p1)
}
 0x852   :  { %1101 = dma.vmem_to_hbm [thread:$0]  %s1099_s17, 16, %s1716_s6, [#allocation5]  }
 0x853   :  { %1239 = dma.done.wait [#allocation5], 16  }
 0x854   :  { %1240 = vsyncadd [#allocation5], 4294967280 }
 0x855   :  { %1105 = vsyncpa [#allocation4], 1 }
 0x856   :  { %1106 = vsyncpa [#allocation5], 1 }

</bundles_post_ra>
